<compile_context>
chip_gen: v5e
topology: v5e:2x2
jax: 0.10.0
libtpu: 0.0.40
codegen_flags: <defaults>
</compile_context>

<pallas_src>
import jax
import jax.numpy as jnp
from jax.experimental import pallas as pl
from jax.experimental.pallas import tpu as pltpu


# ----------------------------------------------------------------------------
# Kernel
# ----------------------------------------------------------------------------
def _critic_kernel(x_ref, w1_ref, w2_ref, w3_ref, b_ref, out_ref):
    """One grid point = one batch tile, both Q networks fused.

    Refs:
      x_ref   : (TILE_B, K_pad)  bf16   concat(state, action), zero-padded
      w1_ref  : (K_pad, 2H)      bf16   [W1_q1 | W1_q2]
      w2_ref  : (2, H, H)        bf16   stacked W2 of both nets
      w3_ref  : (2, H, 128)      bf16   net0 head in lane 0, net1 head in lane 1
      b_ref   : (3, 2H)          f32    row0=[b1_q1|b1_q2], row1=[b2_q1|b2_q2],
                                        row2 lanes 0/1 = b3_q1/b3_q2
      out_ref : (TILE_B, 128)    f32    q1 in lane 0, q2 in lane 1
    """
    H = w2_ref.shape[-1]

    # Layer 1 for both nets in a single MXU push.
    h1 = jnp.dot(x_ref[...], w1_ref[...], preferred_element_type=jnp.float32)
    h1 = jnp.maximum(h1 + b_ref[0:1, :], 0.0).astype(jnp.bfloat16)

    # Layer 2 per net (lane-aligned slices of h1).
    h2a = jnp.dot(h1[:, :H], w2_ref[0], preferred_element_type=jnp.float32)
    h2a = jnp.maximum(h2a + b_ref[1:2, :H], 0.0).astype(jnp.bfloat16)
    h2b = jnp.dot(h1[:, H:], w2_ref[1], preferred_element_type=jnp.float32)
    h2b = jnp.maximum(h2b + b_ref[1:2, H:], 0.0).astype(jnp.bfloat16)

    # Layer 3: both padded heads into one lane-dense 128-lane output block
    # (q1 in lane 0, q2 in lane 1, remaining lanes exactly zero).
    out_ref[...] = (
        jnp.dot(h2a, w3_ref[0], preferred_element_type=jnp.float32)
        + jnp.dot(h2b, w3_ref[1], preferred_element_type=jnp.float32)
        + b_ref[2:3, 0:128])


# ----------------------------------------------------------------------------
# Parameter init / packing
# ----------------------------------------------------------------------------
def _round_up(x, m):
    return ((x + m - 1) // m) * m


def init_q_params(key, in_dim, hidden, out_dim=1):
    """Synthetic init for one QFunction MLP (in -> 256 -> 256 -> 1)."""
    k1, k2, k3, k4, k5, k6 = jax.random.split(key, 6)
    s1 = 1.0 / jnp.sqrt(jnp.float32(in_dim))
    s2 = 1.0 / jnp.sqrt(jnp.float32(hidden))
    w1 = jax.random.uniform(k1, (in_dim, hidden), jnp.float32, -s1, s1)
    b1 = jax.random.uniform(k4, (hidden,), jnp.float32, -s1, s1)
    w2 = jax.random.uniform(k2, (hidden, hidden), jnp.float32, -s2, s2)
    b2 = jax.random.uniform(k5, (hidden,), jnp.float32, -s2, s2)
    w3 = jax.random.uniform(k3, (hidden, out_dim), jnp.float32, -s2, s2)
    b3 = jax.random.uniform(k6, (out_dim,), jnp.float32, -s2, s2)
    return (w1, b1, w2, b2, w3, b3)


def pack_critic_params(params_q1, params_q2, head_lanes=128):
    """Pack both Q networks into a few lane-dense, MXU-friendly arrays."""
    w1a, b1a, w2a, b2a, w3a, b3a = params_q1
    w1b, b1b, w2b, b2b, w3b, b3b = params_q2
    K, H = w1a.shape
    K_pad = _round_up(K, 16)                       # bf16 sublane-friendly

    # [W1_q1 | W1_q2] with zero rows for the K padding.
    w1 = jnp.zeros((K_pad, 2 * H), jnp.float32)
    w1 = w1.at[:K, :H].set(w1a).at[:K, H:].set(w1b).astype(jnp.bfloat16)

    w2 = jnp.stack([w2a, w2b]).astype(jnp.bfloat16)            # (2, H, H)

    # Padded heads: net0's column in lane 0, net1's column in lane 1.
    w3 = jnp.zeros((2, H, head_lanes), jnp.float32)
    w3 = (w3.at[0, :, 0].set(w3a[:, 0])
             .at[1, :, 1].set(w3b[:, 0])).astype(jnp.bfloat16)

    biases = jnp.zeros((3, 2 * H), jnp.float32)
    biases = (biases.at[0, :H].set(b1a).at[0, H:].set(b1b)
                    .at[1, :H].set(b2a).at[1, H:].set(b2b)
                    .at[2, 0].set(b3a[0]).at[2, 1].set(b3b[0]))

    return (w1, w2, w3, biases)


# ----------------------------------------------------------------------------
# Wrapper
# ----------------------------------------------------------------------------
def critic_forward(state, action, packed_params):
    """Pallas-backed Critic.forward: returns (Q1(s,a), Q2(s,a)), each (B, 1)."""
    w1, w2, w3, biases = packed_params
    B, S = state.shape
    A = action.shape[1]
    K_pad, H2 = w1.shape
    H = H2 // 2
    L = w3.shape[-1]                     # 128 padded output lanes

    # Batch tiling: big tiles amortize the ~600-cycle per-step overhead
    # (cap 512; sweeping to 1024 is also safe VMEM-wise on all generations).
    if B >= 512:
        tile_b = 512
    else:
        tile_b = _round_up(max(B, 8), 16)
    b_pad = _round_up(B, tile_b)
    n_tiles = b_pad // tile_b

    # Single packed input: concat(state, action), padded to (b_pad, K_pad).
    x = jnp.concatenate([state, action], axis=1).astype(jnp.bfloat16)
    x = jnp.pad(x, ((0, b_pad - B), (0, K_pad - (S + A))))

    flops = 2 * b_pad * (K_pad * H2 + 2 * H * H + 2 * H * L)
    bytes_accessed = (2 * x.size                                 # bf16 input
                      + 2 * (w1.size + w2.size + w3.size)        # bf16 weights
                      + 4 * biases.size
                      + 4 * b_pad * L)                           # f32 output
    cost = pl.CostEstimate(flops=flops, transcendentals=0,
                           bytes_accessed=bytes_accessed)

    out = pl.pallas_call(
        _critic_kernel,
        out_shape=jax.ShapeDtypeStruct((b_pad, L), jnp.float32),
        grid=(n_tiles,),
        in_specs=[
            pl.BlockSpec((tile_b, K_pad), lambda i: (i, 0)),   # packed input
            pl.BlockSpec((K_pad, H2), lambda i: (0, 0)),       # fused W1
            pl.BlockSpec((2, H, H), lambda i: (0, 0, 0)),      # stacked W2
            pl.BlockSpec((2, H, L), lambda i: (0, 0, 0)),      # padded heads
            pl.BlockSpec((3, H2), lambda i: (0, 0)),           # packed biases
        ],
        out_specs=pl.BlockSpec((tile_b, L), lambda i: (i, 0)),
        compiler_params=pltpu.CompilerParams(
            dimension_semantics=("parallel",)),
        cost_estimate=cost,
    )(x, w1, w2, w3, biases)

    q1 = out[:B, 0:1]
    q2 = out[:B, 1:2]
    return q1, q2


# ----------------------------------------------------------------------------
# Pure-JAX reference (same bf16-in / f32-accumulate math as the kernel)
# ----------------------------------------------------------------------------
def _reference_forward(state, action, params_q1, params_q2):
    x = jnp.concatenate([state, action], axis=1).astype(jnp.float32)

    def mlp(p):
        w1, b1, w2, b2, w3, b3 = p
        xb = x.astype(jnp.bfloat16)
        h1 = jnp.maximum(
            jnp.dot(xb, w1.astype(jnp.bfloat16),
                    preferred_element_type=jnp.float32) + b1, 0.0)
        h2 = jnp.maximum(
            jnp.dot(h1.astype(jnp.bfloat16), w2.astype(jnp.bfloat16),
                    preferred_element_type=jnp.float32) + b2, 0.0)
        return jnp.dot(h2.astype(jnp.bfloat16), w3.astype(jnp.bfloat16),
                       preferred_element_type=jnp.float32) + b3

    return mlp(params_q1), mlp(params_q2)


# ----------------------------------------------------------------------------
# Self-test
# ----------------------------------------------------------------------------
if __name__ == "__main__":
    batch = 8
    state_dim = 16
    action_dim = 8
    hidden = 256
    in_dim = state_dim + action_dim

    key = jax.random.PRNGKey(0)
    k_state, k_action, k_q1, k_q2 = jax.random.split(key, 4)

    state = jax.random.normal(k_state, (batch, state_dim), jnp.float32)
    action = jax.random.normal(k_action, (batch, action_dim), jnp.float32)

    params_q1 = init_q_params(k_q1, in_dim, hidden)
    params_q2 = init_q_params(k_q2, in_dim, hidden)
    packed = pack_critic_params(params_q1, params_q2)

    q1, q2 = jax.jit(critic_forward)(state, action, packed)
    jax.block_until_ready((q1, q2))

    r1, r2 = _reference_forward(state, action, params_q1, params_q2)
    assert q1.shape == (batch, 1) and q2.shape == (batch, 1)
    assert jnp.allclose(q1, r1, atol=1e-3, rtol=1e-3)
    assert jnp.allclose(q2, r2, atol=1e-3, rtol=1e-3)

    print("KERNEL_OK")
</pallas_src>

<mosaic_0001>
module attributes {stable_mosaic.version = 11 : i64} {
  func.func @_critic_kernel(%arg0: i32, %arg1: memref<16x32xbf16, #tpu.memory_space<vmem>>, %arg2: memref<32x512xbf16, #tpu.memory_space<vmem>>, %arg3: memref<2x256x256xbf16, #tpu.memory_space<vmem>>, %arg4: memref<2x256x128xbf16, #tpu.memory_space<vmem>>, %arg5: memref<3x512xf32, #tpu.memory_space<vmem>>, %arg6: memref<16x128xf32, #tpu.memory_space<vmem>>) attributes {dimension_semantics = [#tpu.dimension_semantics<parallel>], iteration_bounds = array<i64: 1>, scalar_prefetch = 0 : i64, scratch_operands = 0 : i64, tpu.core_type = #tpu.core_type<tc>, window_params = [{transform_indices = @transform_0, window_bounds = array<i64: 16, 32>}, {pipeline_mode = #tpu.pipeline_mode<synchronous>, transform_indices = @transform_1, window_bounds = array<i64: 32, 512>}, {pipeline_mode = #tpu.pipeline_mode<synchronous>, transform_indices = @transform_2, window_bounds = array<i64: 2, 256, 256>}, {pipeline_mode = #tpu.pipeline_mode<synchronous>, transform_indices = @transform_3, window_bounds = array<i64: 2, 256, 128>}, {pipeline_mode = #tpu.pipeline_mode<synchronous>, transform_indices = @transform_4, window_bounds = array<i64: 3, 512>}, {transform_indices = @transform_5, window_bounds = array<i64: 16, 128>}]} {
    %c0 = arith.constant 0 : index
    %c0_0 = arith.constant 0 : index
    %0 = vector.load %arg1[%c0, %c0_0] : memref<16x32xbf16, #tpu.memory_space<vmem>>, vector<16x32xbf16>
    %c0_1 = arith.constant 0 : index
    %c0_2 = arith.constant 0 : index
    %1 = vector.load %arg2[%c0_1, %c0_2] : memref<32x512xbf16, #tpu.memory_space<vmem>>, vector<32x512xbf16>
    %cst = arith.constant dense<0.000000e+00> : vector<16x512xf32>
    %2 = tpu.matmul %0, %1, %cst {dimension_numbers = #tpu.dot_dimension_numbers<[1], [0], [0], [1], [0, 0, 1, 1], [], []>} : vector<16x32xbf16>, vector<32x512xbf16>, vector<16x512xf32> -> vector<16x512xf32>
    %c0_3 = arith.constant 0 : index
    %c0_4 = arith.constant 0 : index
    %3 = vector.load %arg5[%c0_3, %c0_4] : memref<3x512xf32, #tpu.memory_space<vmem>>, vector<1x512xf32>
    %4 = vector.broadcast %3 : vector<1x512xf32> to vector<16x512xf32>
    %5 = arith.addf %2, %4 : vector<16x512xf32>
    %cst_5 = arith.constant 0.000000e+00 : f32
    %6 = vector.broadcast %cst_5 : f32 to vector<16x512xf32>
    %7 = arith.maximumf %5, %6 : vector<16x512xf32>
    %8 = arith.truncf %7 : vector<16x512xf32> to vector<16x512xbf16>
    %9 = vector.extract_strided_slice %8 {offsets = [0, 0], sizes = [16, 256], strides = [1, 1]} : vector<16x512xbf16> to vector<16x256xbf16>
    %c0_6 = arith.constant 0 : index
    %c0_7 = arith.constant 0 : index
    %c0_8 = arith.constant 0 : index
    %10 = vector.load %arg3[%c0_6, %c0_7, %c0_8] : memref<2x256x256xbf16, #tpu.memory_space<vmem>>, vector<1x256x256xbf16>
    %11 = vector.shape_cast %10 : vector<1x256x256xbf16> to vector<256x256xbf16>
    %cst_9 = arith.constant dense<0.000000e+00> : vector<16x256xf32>
    %12 = tpu.matmul %9, %11, %cst_9 {dimension_numbers = #tpu.dot_dimension_numbers<[1], [0], [0], [1], [0, 0, 1, 1], [], []>} : vector<16x256xbf16>, vector<256x256xbf16>, vector<16x256xf32> -> vector<16x256xf32>
    %c1 = arith.constant 1 : index
    %c0_10 = arith.constant 0 : index
    %13 = vector.load %arg5[%c1, %c0_10] : memref<3x512xf32, #tpu.memory_space<vmem>>, vector<1x256xf32>
    %14 = vector.broadcast %13 : vector<1x256xf32> to vector<16x256xf32>
    %15 = arith.addf %12, %14 : vector<16x256xf32>
    %cst_11 = arith.constant 0.000000e+00 : f32
    %16 = vector.broadcast %cst_11 : f32 to vector<16x256xf32>
    %17 = arith.maximumf %15, %16 : vector<16x256xf32>
    %18 = arith.truncf %17 : vector<16x256xf32> to vector<16x256xbf16>
    %19 = vector.extract_strided_slice %8 {offsets = [0, 256], sizes = [16, 256], strides = [1, 1]} : vector<16x512xbf16> to vector<16x256xbf16>
    %c1_12 = arith.constant 1 : index
    %c0_13 = arith.constant 0 : index
    %c0_14 = arith.constant 0 : index
    %20 = vector.load %arg3[%c1_12, %c0_13, %c0_14] : memref<2x256x256xbf16, #tpu.memory_space<vmem>>, vector<1x256x256xbf16>
    %21 = vector.shape_cast %20 : vector<1x256x256xbf16> to vector<256x256xbf16>
    %cst_15 = arith.constant dense<0.000000e+00> : vector<16x256xf32>
    %22 = tpu.matmul %19, %21, %cst_15 {dimension_numbers = #tpu.dot_dimension_numbers<[1], [0], [0], [1], [0, 0, 1, 1], [], []>} : vector<16x256xbf16>, vector<256x256xbf16>, vector<16x256xf32> -> vector<16x256xf32>
    %c1_16 = arith.constant 1 : index
    %c256 = arith.constant 256 : index
    %23 = vector.load %arg5[%c1_16, %c256] : memref<3x512xf32, #tpu.memory_space<vmem>>, vector<1x256xf32>
    %24 = vector.broadcast %23 : vector<1x256xf32> to vector<16x256xf32>
    %25 = arith.addf %22, %24 : vector<16x256xf32>
    %cst_17 = arith.constant 0.000000e+00 : f32
    %26 = vector.broadcast %cst_17 : f32 to vector<16x256xf32>
    %27 = arith.maximumf %25, %26 : vector<16x256xf32>
    %28 = arith.truncf %27 : vector<16x256xf32> to vector<16x256xbf16>
    %c0_18 = arith.constant 0 : index
    %c0_19 = arith.constant 0 : index
    %c0_20 = arith.constant 0 : index
    %29 = vector.load %arg4[%c0_18, %c0_19, %c0_20] : memref<2x256x128xbf16, #tpu.memory_space<vmem>>, vector<1x256x128xbf16>
    %30 = vector.shape_cast %29 : vector<1x256x128xbf16> to vector<256x128xbf16>
    %cst_21 = arith.constant dense<0.000000e+00> : vector<16x128xf32>
    %31 = tpu.matmul %18, %30, %cst_21 {dimension_numbers = #tpu.dot_dimension_numbers<[1], [0], [0], [1], [0, 0, 1, 1], [], []>} : vector<16x256xbf16>, vector<256x128xbf16>, vector<16x128xf32> -> vector<16x128xf32>
    %c1_22 = arith.constant 1 : index
    %c0_23 = arith.constant 0 : index
    %c0_24 = arith.constant 0 : index
    %32 = vector.load %arg4[%c1_22, %c0_23, %c0_24] : memref<2x256x128xbf16, #tpu.memory_space<vmem>>, vector<1x256x128xbf16>
    %33 = vector.shape_cast %32 : vector<1x256x128xbf16> to vector<256x128xbf16>
    %cst_25 = arith.constant dense<0.000000e+00> : vector<16x128xf32>
    %34 = tpu.matmul %28, %33, %cst_25 {dimension_numbers = #tpu.dot_dimension_numbers<[1], [0], [0], [1], [0, 0, 1, 1], [], []>} : vector<16x256xbf16>, vector<256x128xbf16>, vector<16x128xf32> -> vector<16x128xf32>
    %35 = arith.addf %31, %34 : vector<16x128xf32>
    %c2 = arith.constant 2 : index
    %c0_26 = arith.constant 0 : index
    %36 = vector.load %arg5[%c2, %c0_26] : memref<3x512xf32, #tpu.memory_space<vmem>>, vector<1x128xf32>
    %37 = vector.broadcast %36 : vector<1x128xf32> to vector<16x128xf32>
    %38 = arith.addf %35, %37 : vector<16x128xf32>
    %c0_27 = arith.constant 0 : index
    %c0_28 = arith.constant 0 : index
    %39 = vector.load %arg6[%c0_27, %c0_28] : memref<16x128xf32, #tpu.memory_space<vmem>>, vector<16x128xf32>
    tpu.vector_store %arg6[%c0_27, %c0_28], %38 {strides = array<i32>} : memref<16x128xf32, #tpu.memory_space<vmem>>, vector<16x128xf32>,
    return
  }
  func.func @transform_0(%arg0: i32) -> (i32, i32) {
    %c0_i32 = arith.constant 0 : i32
    %c0_i32_0 = arith.constant 0 : i32
    return %arg0, %c0_i32 : i32, i32
  }
  func.func @transform_1(%arg0: i32) -> (i32, i32) {
    %c0_i32 = arith.constant 0 : i32
    %c0_i32_0 = arith.constant 0 : i32
    %c0_i32_1 = arith.constant 0 : i32
    return %c0_i32, %c0_i32_0 : i32, i32
  }
  func.func @transform_2(%arg0: i32) -> (i32, i32, i32) {
    %c0_i32 = arith.constant 0 : i32
    %c0_i32_0 = arith.constant 0 : i32
    %c0_i32_1 = arith.constant 0 : i32
    %c0_i32_2 = arith.constant 0 : i32
    return %c0_i32, %c0_i32_0, %c0_i32_1 : i32, i32, i32
  }
  func.func @transform_3(%arg0: i32) -> (i32, i32, i32) {
    %c0_i32 = arith.constant 0 : i32
    %c0_i32_0 = arith.constant 0 : i32
    %c0_i32_1 = arith.constant 0 : i32
    %c0_i32_2 = arith.constant 0 : i32
    return %c0_i32, %c0_i32_0, %c0_i32_1 : i32, i32, i32
  }
  func.func @transform_4(%arg0: i32) -> (i32, i32) {
    %c0_i32 = arith.constant 0 : i32
    %c0_i32_0 = arith.constant 0 : i32
    %c0_i32_1 = arith.constant 0 : i32
    return %c0_i32, %c0_i32_0 : i32, i32
  }
  func.func @transform_5(%arg0: i32) -> (i32, i32) {
    %c0_i32 = arith.constant 0 : i32
    %c0_i32_0 = arith.constant 0 : i32
    return %arg0, %c0_i32 : i32, i32
  }
}

</mosaic_0001>

<bundles_post_ra>
// kernel: critic_forward.1
= control target key start
LH: loop header
LB: loop body
LE: loop exit
PB: predicated region body
PF: predicated region fallthrough
CT: control target
= control target key end

     0   :  { %10 = vsyncpa [#allocation3], 0  ;;  %s1769_s0 = inlined_call_operand.vmem [shape: bf16[16,32], index: 0, kind: input, shape index: {}]   ;;  %s1770_s1 = inlined_call_operand.hbm [shape: bf16[32,512], index: 1, kind: input, shape index: {}]   ;;  %s1771_s2 = inlined_call_operand.hbm [shape: bf16[2,256,256], index: 2, kind: input, shape index: {}]   ;;  %s1772_s3 = inlined_call_operand.hbm [shape: bf16[2,256,128], index: 3, kind: input, shape index: {}]   ;;  %s1773_s4 = inlined_call_operand.vmem [shape: f32[3,512], index: 4, kind: input, shape index: {}]   ;;  %s1774_s5 = inlined_call_operand.vmem [shape: f32[16,128], index: 5, kind: output, shape index: {}]  }
   0x1   :  { %11 = vsyncpa [#allocation5], 0  ;;  %s31_s20 = sshll.u32 %s1771_s2, 4  ;;  %s1690_s21 = smov [#allocation4]   ;;  %s32_s20 = int_to_ptr.hbm [resolvable:$true] %s31_s20 }
   0x2   :  { %s33_s22 = sshll.u32 %s1690_s21, 4  ;;  %s18_s25 = sshll.u32 %s1770_s1, 4  ;;  %s34_s22 = int_to_ptr.vmem [resolvable:$true] %s33_s22  ;;  %s19_s25 = int_to_ptr.hbm [resolvable:$true] %s18_s25 }
   0x3   :  { %s1691_s26 = smov 128   ;;  %s1692_s27 = smov 8  }
   0x4   :  { %39 = dma.hbm_to_vmem [thread:$0]  %s32_s20, 8192, %s34_s22, [#allocation5], %s1691_s26, %s1691_s26, %s1692_s27  }
   0x5   :  { %s1693_s28 = smov [#allocation2]   ;;  %s1694_s30 = smov 256  }
   0x6   :  { %s20_s29 = sshll.u32 %s1693_s28, 4  ;;  %s1695_s6 = smov 16   ;;  %s21_s29 = int_to_ptr.vmem [resolvable:$true] %s20_s29 }
   0x7   :  { %26 = dma.hbm_to_vmem [thread:$0]  %s19_s25, 1024, %s21_s29, [#allocation3], %s1694_s30, %s1694_s30, %s1695_s6  }
   0x8   :  { %s44_s8 = sshll.u32 %s1772_s3, 4  ;;  %s1696_s9 = smov [#allocation6]   ;;  %s45_s8 = int_to_ptr.hbm [resolvable:$true] %s44_s8 }
   0x9   :  { %s46_s10 = sshll.u32 %s1696_s9, 4  ;;  %s1697_s11 = smov 64   ;;  %s47_s10 = int_to_ptr.vmem [resolvable:$true] %s46_s10 }
   0xa   :  { %s1698_s1 = smov 4  }
   0xb   :  { %52 = dma.hbm_to_vmem [thread:$0]  %s45_s8, 4096, %s47_s10, [#allocation5], %s1697_s11, %s1697_s11, %s1698_s1  }
   0xc   :  { %1686 = dma.done.wait [#allocation3], 1024  }
   0xd   :  { %1687 = vsyncadd [#allocation3], 4294966272 }
   0xe   :  { %1688 = dma.done.wait [#allocation5], 12288  }
   0xf   :  { %1689 = vsyncadd [#allocation5], 4294955008  ;;  %v1095_v0 = vld [vmem:[#allocation2 + $0x20] sm:$0xf]  ;;  %v1506_v1 = vld [vmem:[#allocation2 + $0x2c] sm:$0xf0] }
  0x10   :  { %v1504_v2 = vld [vmem:[#allocation2 + $0x24] sm:$0xf]  ;;  %v1096_v3 = vor.u32 %v1506_v1, %v1095_v0  ;;  %v1097_v4 = vld [vmem:[#allocation2 + $0x30] sm:$0xf0]  ;;  %v1103_v5 = vld [vmem:[#allocation2 + $0x28] sm:$0xf] }
  0x11   :  { %v1507_v6 = vld [vmem:[#allocation2 + $0x34] sm:$0xf0]  ;;  %v1100_v7 = vor.u32 %v1504_v2, %v1097_v4  ;;  %v1505_v9 = vld [vmem:[#allocation2 + $0x2c] sm:$0xf]  ;;  %v1105_v10 = vld [vmem:[#allocation2 + $0x38] sm:$0xf0] }
  0x12   :  { %v1104_v8 = vor.u32 %v1507_v6, %v1103_v5  ;;  %v1079_v11 = vld [vmem:[#allocation2] sm:$0xf]  ;;  %143 = vmatpush.bf16.msra.mxu0 %v1096_v3  ;;  %v1108_v12 = vor.u32 %v1505_v9, %v1105_v10  ;;  %v1502_v13 = vld [vmem:[#allocation2 + $0xc] sm:$0xf0]  ;;  %v1500_v14 = vld [vmem:[#allocation2 + $0x4] sm:$0xf] }
  0x13   :  { %v1081_v15 = vld [vmem:[#allocation2 + $0x10] sm:$0xf0]  ;;  %157 = vmatpush.bf16.msra.mxu1 %v1100_v7  ;;  %v1080_v16 = vor.u32 %v1502_v13, %v1079_v11  ;;  %v1087_v18 = vld [vmem:[#allocation2 + $0x8] sm:$0xf]  ;;  %v1503_v19 = vld [vmem:[#allocation2 + $0x14] sm:$0xf0] }
  0x14   :  { %171 = vmatpush.bf16.msra.mxu2 %v1104_v8  ;;  %v1084_v17 = vor.u32 %v1500_v14, %v1081_v15  ;;  %v1501_v20 = vld [vmem:[#allocation2 + $0xc] sm:$0xf]  ;;  %185 = vmatpush.bf16.msra.mxu3 %v1108_v12  ;;  %v1088_v21 = vor.u32 %v1503_v19, %v1087_v18  ;;  %v1089_v22 = vld [vmem:[#allocation2 + $0x18] sm:$0xf0]  ;;  %v1499_v23 = vld [vmem:[%s1769_s0] sm:$0xff]  ;;  %vm133_vm0 = vcmask 261120  }
  0x15   :  { %v1172_v24 = vld [vmem:[#allocation4 + $0x70] sm:$0xf]  ;;  %v1092_v25 = vor.u32 %v1501_v20, %v1089_v22  ;;  %v1523_v26 = vld [vmem:[#allocation4 + $0x74] sm:$0xf0]  ;;  %v1522_v31 = vld [vmem:[#allocation4 + $0x74] sm:$0xf] }
  0x16   :  { %v1236_v27 = vld [vmem:[#allocation4 + $0xf0] sm:$0xf]  ;;  %v1539_v28 = vld [vmem:[#allocation4 + $0xf4] sm:$0xf0]  ;;  %144 = vmatpush.bf16.msra.mxu0 %v1080_v16  ;;  %v1173_v29 = vor.u32 %v1523_v26, %v1172_v24  ;;  %v1174_v32 = vld [vmem:[#allocation4 + $0x78] sm:$0xf0] }
  0x17   :  { %v1237_v30 = vor.u32 %v1539_v28, %v1236_v27  ;;  %v1538_v33 = vld [vmem:[#allocation4 + $0xf4] sm:$0xf]  ;;  %158 = vmatpush.bf16.msra.mxu1 %v1084_v17  ;;  %v1177_v34 = vor.u32 %v1522_v31, %v1174_v32  ;;  %v1238_v35 = vld [vmem:[#allocation4 + $0xf8] sm:$0xf0]  ;;  %v1164_v36 = vld [vmem:[#allocation4 + $0x60] sm:$0xf] }
  0x18   :  { %172 = vmatpush.bf16.msra.mxu2 %v1088_v21  ;;  %v1521_v37 = vld [vmem:[#allocation4 + $0x64] sm:$0xf0]  ;;  %186 = vmatpush.bf16.msra.mxu3 %v1092_v25  ;;  %v1241_v38 = vor.u32 %v1538_v33, %v1238_v35  ;;  %v1228_v40 = vld [vmem:[#allocation4 + $0xe0] sm:$0xf]  ;;  %v1520_v42 = vld [vmem:[#allocation4 + $0x64] sm:$0xf] }
  0x19   :  { %v1165_v39 = vor.u32 %v1521_v37, %v1164_v36  ;;  %v1537_v41 = vld [vmem:[#allocation4 + $0xe4] sm:$0xf0]  ;;  %1109 = vmatmul.msk.bf16.vlgmr.msra.gmra.mxu0 %vm133_vm0, %v1499_v23  ;;  %v1166_v44 = vld [vmem:[#allocation4 + $0x68] sm:$0xf0]  ;;  %v1536_v45 = vld [vmem:[#allocation4 + $0xe4] sm:$0xf] }
  0x1a   :  { %414 = vmatpush.bf16.msrb.mxu0 %v1173_v29  ;;  %v1229_v43 = vor.u32 %v1537_v41, %v1228_v40  ;;  %v1230_v46 = vld [vmem:[#allocation4 + $0xe8] sm:$0xf0]  ;;  %1110 = vmatmul.msk.bf16.vlgmr.msra.gmra.mxu1 %vm133_vm0, %v1499_v23  ;;  %v1156_v47 = vld [vmem:[#allocation4 + $0x50] sm:$0xf]  ;;  %v1519_v48 = vld [vmem:[#allocation4 + $0x54] sm:$0xf0]  ;;  %v1169_v50 = vor.u32 %v1520_v42, %v1166_v44 }
  0x1b   :  { %428 = vmatpush.bf16.msrb.mxu1 %v1237_v30  ;;  %1111 = vmatmul.msk.bf16.vlgmr.msra.gmra.mxu2 %vm133_vm0, %v1499_v23  ;;  %v1220_v49 = vld [vmem:[#allocation4 + $0xd0] sm:$0xf]  ;;  %v1535_v51 = vld [vmem:[#allocation4 + $0xd4] sm:$0xf0]  ;;  %v1233_v52 = vor.u32 %v1536_v45, %v1230_v46  ;;  %v1157_v53 = vor.u32 %v1519_v48, %v1156_v47  ;;  %v1518_v54 = vld [vmem:[#allocation4 + $0x54] sm:$0xf] }
  0x1c   :  { %1112 = vmatmul.msk.bf16.vlgmr.msra.gmra.mxu3 %vm133_vm0, %v1499_v23  ;;  %442 = vmatpush.bf16.msrb.mxu2 %v1177_v34  ;;  %v1158_v55 = vld [vmem:[#allocation4 + $0x58] sm:$0xf0]  ;;  %v1534_v56 = vld [vmem:[#allocation4 + $0xd4] sm:$0xf]  ;;  %v1221_v57 = vor.u32 %v1535_v51, %v1220_v49  ;;  %v1148_v59 = vld [vmem:[#allocation4 + $0x40] sm:$0xf] }
  0x1d   :  { %456 = vmatpush.bf16.msrb.mxu3 %v1241_v38  ;;  %v1222_v58 = vld [vmem:[#allocation4 + $0xd8] sm:$0xf0]  ;;  %v1517_v60 = vld [vmem:[#allocation4 + $0x44] sm:$0xf0]  ;;  %v1212_v61 = vld [vmem:[#allocation4 + $0xc0] sm:$0xf]  ;;  %v1161_v63 = vor.u32 %v1518_v54, %v1158_v55 }
  0x1e   :  { %415 = vmatpush.bf16.msrb.mxu0 %v1165_v39  ;;  %v1533_v62 = vld [vmem:[#allocation4 + $0xc4] sm:$0xf0]  ;;  %v1225_v0 = vor.u32 %v1534_v56, %v1222_v58  ;;  %v1149_v1 = vor.u32 %v1517_v60, %v1148_v59  ;;  %v1516_v2 = vld [vmem:[#allocation4 + $0x44] sm:$0xf]  ;;  %v1150_v3 = vld [vmem:[#allocation4 + $0x48] sm:$0xf0] }
  0x1f   :  { %429 = vmatpush.bf16.msrb.mxu1 %v1229_v43  ;;  %v1532_v4 = vld [vmem:[#allocation4 + $0xc4] sm:$0xf]  ;;  %v1213_v5 = vor.u32 %v1533_v62, %v1212_v61  ;;  %v1214_v6 = vld [vmem:[#allocation4 + $0xc8] sm:$0xf0]  ;;  %v1140_v7 = vld [vmem:[#allocation4 + $0x30] sm:$0xf]  ;;  %v1153_v11 = vor.u32 %v1516_v2, %v1150_v3 }
  0x20   :  { %443 = vmatpush.bf16.msrb.mxu2 %v1169_v50  ;;  %v1515_v8 = vld [vmem:[#allocation4 + $0x34] sm:$0xf0]  ;;  %v1204_v9 = vld [vmem:[#allocation4 + $0xb0] sm:$0xf]  ;;  %v1217_v12 = vor.u32 %v1532_v4, %v1214_v6  ;;  %v1514_v14 = vld [vmem:[#allocation4 + $0x34] sm:$0xf] }
  0x21   :  { %457 = vmatpush.bf16.msrb.mxu3 %v1233_v52  ;;  %v1531_v10 = vld [vmem:[#allocation4 + $0xb4] sm:$0xf0]  ;;  %v1141_v13 = vor.u32 %v1515_v8, %v1140_v7  ;;  %v1142_v15 = vld [vmem:[#allocation4 + $0x38] sm:$0xf0]  ;;  %v1530_v16 = vld [vmem:[#allocation4 + $0xb4] sm:$0xf] }
  0x22   :  { %416 = vmatpush.bf16.msrb.mxu0 %v1157_v53  ;;  %v1205_v17 = vor.u32 %v1531_v10, %v1204_v9  ;;  %v1206_v18 = vld [vmem:[#allocation4 + $0xb8] sm:$0xf0]  ;;  %v1132_v19 = vld [vmem:[#allocation4 + $0x20] sm:$0xf]  ;;  %v1513_v20 = vld [vmem:[#allocation4 + $0x24] sm:$0xf0]  ;;  %v1145_v23 = vor.u32 %v1514_v14, %v1142_v15 }
  0x23   :  { %430 = vmatpush.bf16.msrb.mxu1 %v1221_v57  ;;  %v1196_v21 = vld [vmem:[#allocation4 + $0xa0] sm:$0xf]  ;;  %v1529_v22 = vld [vmem:[#allocation4 + $0xa4] sm:$0xf0]  ;;  %v1512_v24 = vld [vmem:[#allocation4 + $0x24] sm:$0xf]  ;;  %v1209_v25 = vor.u32 %v1530_v16, %v1206_v18  ;;  %v1133_v26 = vor.u32 %v1513_v20, %v1132_v19 }
  0x24   :  { %444 = vmatpush.bf16.msrb.mxu2 %v1161_v63  ;;  %v1134_v27 = vld [vmem:[#allocation4 + $0x28] sm:$0xf0]  ;;  %v1528_v28 = vld [vmem:[#allocation4 + $0xa4] sm:$0xf]  ;;  %v1197_v29 = vor.u32 %v1529_v22, %v1196_v21  ;;  %v1124_v31 = vld [vmem:[#allocation4 + $0x10] sm:$0xf] }
  0x25   :  { %458 = vmatpush.bf16.msrb.mxu3 %v1225_v0  ;;  %v1198_v30 = vld [vmem:[#allocation4 + $0xa8] sm:$0xf0]  ;;  %v1511_v32 = vld [vmem:[#allocation4 + $0x14] sm:$0xf0]  ;;  %v1188_v33 = vld [vmem:[#allocation4 + $0x90] sm:$0xf]  ;;  %v1137_v35 = vor.u32 %v1512_v24, %v1134_v27 }
  0x26   :  { %417 = vmatpush.bf16.msrb.mxu0 %v1149_v1  ;;  %v1527_v34 = vld [vmem:[#allocation4 + $0x94] sm:$0xf0]  ;;  %v1201_v36 = vor.u32 %v1528_v28, %v1198_v30  ;;  %v1125_v37 = vor.u32 %v1511_v32, %v1124_v31  ;;  %v1510_v38 = vld [vmem:[#allocation4 + $0x14] sm:$0xf]  ;;  %v1126_v39 = vld [vmem:[#allocation4 + $0x18] sm:$0xf0] }
  0x27   :  { %431 = vmatpush.bf16.msrb.mxu1 %v1213_v5  ;;  %v1189_v40 = vor.u32 %v1527_v34, %v1188_v33  ;;  %v1526_v41 = vld [vmem:[#allocation4 + $0x94] sm:$0xf]  ;;  %v1190_v42 = vld [vmem:[#allocation4 + $0x98] sm:$0xf0]  ;;  %v1129_v43 = vor.u32 %v1510_v38, %v1126_v39  ;;  %v1116_v45 = vld [vmem:[#allocation4] sm:$0xf] }
  0x28   :  { %445 = vmatpush.bf16.msrb.mxu2 %v1153_v11  ;;  %v1193_v44 = vor.u32 %v1526_v41, %v1190_v42  ;;  %v1509_v46 = vld [vmem:[#allocation4 + $0x4] sm:$0xf0]  ;;  %v1180_v47 = vld [vmem:[#allocation4 + $0x80] sm:$0xf]  ;;  %v1508_v50 = vld [vmem:[#allocation4 + $0x4] sm:$0xf] }
  0x29   :  { %459 = vmatpush.bf16.msrb.mxu3 %v1217_v12  ;;  %v1117_v48 = vor.u32 %v1509_v46, %v1116_v45  ;;  %v1525_v49 = vld [vmem:[#allocation4 + $0x84] sm:$0xf0]  ;;  %v1118_v51 = vld [vmem:[#allocation4 + $0x8] sm:$0xf0]  ;;  %v1524_v54 = vld [vmem:[#allocation4 + $0x84] sm:$0xf] }
  0x2a   :  { %418 = vmatpush.bf16.msrb.mxu0 %v1141_v13  ;;  %v1181_v52 = vor.u32 %v1525_v49, %v1180_v47  ;;  %v1121_v53 = vor.u32 %v1508_v50, %v1118_v51  ;;  %v1182_v55 = vld [vmem:[#allocation4 + $0x88] sm:$0xf0]  ;;  %v1301_v56 = vld [vmem:[#allocation4 + $0x170] sm:$0xf]  ;;  %v1555_v58 = vld [vmem:[#allocation4 + $0x174] sm:$0xf0] }
  0x2b   :  { %432 = vmatpush.bf16.msrb.mxu1 %v1205_v17  ;;  %v1185_v57 = vor.u32 %v1524_v54, %v1182_v55  ;;  %v1365_v59 = vld [vmem:[#allocation4 + $0x1f0] sm:$0xf]  ;;  %v1571_v60 = vld [vmem:[#allocation4 + $0x1f4] sm:$0xf0]  ;;  %v1302_v61 = vor.u32 %v1555_v58, %v1301_v56  ;;  %v1554_v63 = vld [vmem:[#allocation4 + $0x174] sm:$0xf] }
  0x2c   :  { %446 = vmatpush.bf16.msrb.mxu2 %v1145_v23  ;;  %v1366_v62 = vor.u32 %v1571_v60, %v1365_v59  ;;  %v1303_v0 = vld [vmem:[#allocation4 + $0x178] sm:$0xf0]  ;;  %v1570_v1 = vld [vmem:[#allocation4 + $0x1f4] sm:$0xf]  ;;  %v1293_v4 = vld [vmem:[#allocation4 + $0x160] sm:$0xf] }
  0x2d   :  { %460 = vmatpush.bf16.msrb.mxu3 %v1209_v25  ;;  %v1306_v2 = vor.u32 %v1554_v63, %v1303_v0  ;;  %v1367_v3 = vld [vmem:[#allocation4 + $0x1f8] sm:$0xf0]  ;;  %v1553_v5 = vld [vmem:[#allocation4 + $0x164] sm:$0xf0]  ;;  %v1357_v8 = vld [vmem:[#allocation4 + $0x1e0] sm:$0xf] }
  0x2e   :  { %419 = vmatpush.bf16.msrb.mxu0 %v1133_v26  ;;  %v1370_v6 = vor.u32 %v1570_v1, %v1367_v3  ;;  %v1294_v7 = vor.u32 %v1553_v5, %v1293_v4  ;;  %v1569_v9 = vld [vmem:[#allocation4 + $0x1e4] sm:$0xf0]  ;;  %v1552_v10 = vld [vmem:[#allocation4 + $0x164] sm:$0xf]  ;;  %v1295_v12 = vld [vmem:[#allocation4 + $0x168] sm:$0xf0] }
  0x2f   :  { %433 = vmatpush.bf16.msrb.mxu1 %v1197_v29  ;;  %v1358_v11 = vor.u32 %v1569_v9, %v1357_v8  ;;  %v1568_v13 = vld [vmem:[#allocation4 + $0x1e4] sm:$0xf]  ;;  %v1359_v14 = vld [vmem:[#allocation4 + $0x1e8] sm:$0xf0]  ;;  %v1298_v15 = vor.u32 %v1552_v10, %v1295_v12  ;;  %v1285_v17 = vld [vmem:[#allocation4 + $0x150] sm:$0xf] }
  0x30   :  { %447 = vmatpush.bf16.msrb.mxu2 %v1137_v35  ;;  %v1362_v16 = vor.u32 %v1568_v13, %v1359_v14  ;;  %v1551_v18 = vld [vmem:[#allocation4 + $0x154] sm:$0xf0]  ;;  %v1349_v19 = vld [vmem:[#allocation4 + $0x1d0] sm:$0xf]  ;;  %v1550_v22 = vld [vmem:[#allocation4 + $0x154] sm:$0xf] }
  0x31   :  { %461 = vmatpush.bf16.msrb.mxu3 %v1201_v36  ;;  %v1286_v20 = vor.u32 %v1551_v18, %v1285_v17  ;;  %v1567_v21 = vld [vmem:[#allocation4 + $0x1d4] sm:$0xf0]  ;;  %v1287_v23 = vld [vmem:[#allocation4 + $0x158] sm:$0xf0]  ;;  %v1566_v26 = vld [vmem:[#allocation4 + $0x1d4] sm:$0xf] }
  0x32   :  { %420 = vmatpush.bf16.msrb.mxu0 %v1125_v37  ;;  %v1350_v24 = vor.u32 %v1567_v21, %v1349_v19  ;;  %v1290_v25 = vor.u32 %v1550_v22, %v1287_v23  ;;  %v1351_v27 = vld [vmem:[#allocation4 + $0x1d8] sm:$0xf0]  ;;  %v1277_v29 = vld [vmem:[#allocation4 + $0x140] sm:$0xf]  ;;  %v1549_v30 = vld [vmem:[#allocation4 + $0x144] sm:$0xf0] }
  0x33   :  { %434 = vmatpush.bf16.msrb.mxu1 %v1189_v40  ;;  %v1354_v28 = vor.u32 %v1566_v26, %v1351_v27  ;;  %v1341_v31 = vld [vmem:[#allocation4 + $0x1c0] sm:$0xf]  ;;  %v1278_v32 = vor.u32 %v1549_v30, %v1277_v29  ;;  %v1565_v33 = vld [vmem:[#allocation4 + $0x1c4] sm:$0xf0]  ;;  %v1548_v34 = vld [vmem:[#allocation4 + $0x144] sm:$0xf] }
  0x34   :  { %448 = vmatpush.bf16.msrb.mxu2 %v1129_v43  ;;  %v1279_v35 = vld [vmem:[#allocation4 + $0x148] sm:$0xf0]  ;;  %v1342_v36 = vor.u32 %v1565_v33, %v1341_v31  ;;  %v1564_v38 = vld [vmem:[#allocation4 + $0x1c4] sm:$0xf]  ;;  %v1269_v41 = vld [vmem:[#allocation4 + $0x130] sm:$0xf] }
  0x35   :  { %462 = vmatpush.bf16.msrb.mxu3 %v1193_v44  ;;  %v1282_v37 = vor.u32 %v1548_v34, %v1279_v35  ;;  %v1343_v39 = vld [vmem:[#allocation4 + $0x1c8] sm:$0xf0]  ;;  %v1547_v42 = vld [vmem:[#allocation4 + $0x134] sm:$0xf0]  ;;  %v1333_v43 = vld [vmem:[#allocation4 + $0x1b0] sm:$0xf] }
  0x36   :  { %421 = vmatpush.bf16.msrb.mxu0 %v1117_v48  ;;  %v1346_v40 = vor.u32 %v1564_v38, %v1343_v39  ;;  %v1270_v44 = vor.u32 %v1547_v42, %v1269_v41  ;;  %v1563_v45 = vld [vmem:[#allocation4 + $0x1b4] sm:$0xf0]  ;;  %v1546_v46 = vld [vmem:[#allocation4 + $0x134] sm:$0xf]  ;;  %v1271_v47 = vld [vmem:[#allocation4 + $0x138] sm:$0xf0] }
  0x37   :  { %435 = vmatpush.bf16.msrb.mxu1 %v1181_v52  ;;  %v1334_v48 = vor.u32 %v1563_v45, %v1333_v43  ;;  %v1274_v49 = vor.u32 %v1546_v46, %v1271_v47  ;;  %v1562_v50 = vld [vmem:[#allocation4 + $0x1b4] sm:$0xf]  ;;  %v1335_v51 = vld [vmem:[#allocation4 + $0x1b8] sm:$0xf0]  ;;  %v1545_v54 = vld [vmem:[#allocation4 + $0x124] sm:$0xf0] }
  0x38   :  { %449 = vmatpush.bf16.msrb.mxu2 %v1121_v53  ;;  %v1338_v52 = vor.u32 %v1562_v50, %v1335_v51  ;;  %v1261_v53 = vld [vmem:[#allocation4 + $0x120] sm:$0xf]  ;;  %v1544_v58 = vld [vmem:[#allocation4 + $0x124] sm:$0xf]  ;;  %v1263_v59 = vld [vmem:[#allocation4 + $0x128] sm:$0xf0] }
  0x39   :  { %463 = vmatpush.bf16.msrb.mxu3 %v1185_v57  ;;  %v1325_v55 = vld [vmem:[#allocation4 + $0x1a0] sm:$0xf]  ;;  %v1262_v56 = vor.u32 %v1545_v54, %v1261_v53  ;;  %v1561_v57 = vld [vmem:[#allocation4 + $0x1a4] sm:$0xf0]  ;;  %v1327_v63 = vld [vmem:[#allocation4 + $0x1a8] sm:$0xf0] }
  0x3a   :  { %686 = vmatpush.bf16.msra.mxu0 %v1302_v61  ;;  %v1326_v60 = vor.u32 %v1561_v57, %v1325_v55  ;;  %v1266_v61 = vor.u32 %v1544_v58, %v1263_v59  ;;  %v1253_v0 = vld [vmem:[#allocation4 + $0x110] sm:$0xf]  ;;  %v1559_v4 = vld [vmem:[#allocation4 + $0x194] sm:$0xf0]  ;;  %v1542_v8 = vld [vmem:[#allocation4 + $0x114] sm:$0xf] }
  0x3b   :  { %700 = vmatpush.bf16.msra.mxu1 %v1366_v62  ;;  %v1560_v62 = vld [vmem:[#allocation4 + $0x1a4] sm:$0xf]  ;;  %v1317_v3 = vld [vmem:[#allocation4 + $0x190] sm:$0xf]  ;;  %v1255_v9 = vld [vmem:[#allocation4 + $0x118] sm:$0xf0] }
  0x3c   :  { %714 = vmatpush.bf16.msra.mxu2 %v1306_v2  ;;  %v1330_v1 = vor.u32 %v1560_v62, %v1327_v63  ;;  %v1543_v2 = vld [vmem:[#allocation4 + $0x114] sm:$0xf0]  ;;  %v1748_v5 = vld [vmem:[%s1773_s4] ss:$4 sm:$0xf] }
  0x3d   :  { %728 = vmatpush.bf16.msra.mxu3 %v1370_v6  ;;  %v1254_v6 = vor.u32 %v1543_v2, %v1253_v0  ;;  %v1558_v10 = vld [vmem:[#allocation4 + $0x194] sm:$0xf]  ;;  %v1319_v12 = vld [vmem:[#allocation4 + $0x198] sm:$0xf0]  ;;  %v1245_v13 = vld [vmem:[#allocation4 + $0x100] sm:$0xf] }
  0x3e   :  { %687 = vmatpush.bf16.msra.mxu0 %v1294_v7  ;;  %v1318_v7 = vor.u32 %v1559_v4, %v1317_v3  ;;  %v1541_v14 = vld [vmem:[#allocation4 + $0x104] sm:$0xf0]  ;;  %v1540_v18 = vld [vmem:[#allocation4 + $0x104] sm:$0xf]  ;;  %v1247_v19 = vld [vmem:[#allocation4 + $0x108] sm:$0xf0] }
  0x3f   :  { %701 = vmatpush.bf16.msra.mxu1 %v1358_v11  ;;  %v1258_v11 = vor.u32 %v1542_v8, %v1255_v9  ;;  %v1557_v17 = vld [vmem:[#allocation4 + $0x184] sm:$0xf0]  ;;  %v1311_v21 = vld [vmem:[#allocation4 + $0x188] sm:$0xf0]  ;;  %v1246_v22 = vor.u32 %v1541_v14, %v1245_v13  ;;  %v81_v26 = vperm.slane %v1748_v5, 1  ;;  %v1250_v27 = vor.u32 %v1540_v18, %v1247_v19  ;;  %v1579_v58 = vld [vmem:[#allocation6 + $0x38] sm:$0xff] }
  0x40   :  { %715 = vmatpush.bf16.msra.mxu2 %v1298_v15  ;;  %v1322_v15 = vor.u32 %v1558_v10, %v1319_v12  ;;  %v82_v43 = vperm.slane %v1748_v5, 2  ;;  %v1587_v59 = vld [vmem:[#allocation6 + $0x78] sm:$0xff]  ;;  %v1578_v0 = vld [vmem:[#allocation6 + $0x30] sm:$0xff]  ;;  %v1577_v4 = vld [vmem:[#allocation6 + $0x28] sm:$0xff] }
  0x41   :  { %729 = vmatpush.bf16.msra.mxu3 %v1362_v16  ;;  %v1309_v16 = vld [vmem:[#allocation4 + $0x180] sm:$0xf]  ;;  %v1585_v12 = vld [vmem:[#allocation6 + $0x68] sm:$0xff]  ;;  %v1595_v13 = vld [vmem:[#allocation6 + $0xb8] sm:$0xff] }
  0x42   :  { %688 = vmatpush.bf16.msra.mxu0 %v1286_v20  ;;  %v1556_v20 = vld [vmem:[#allocation4 + $0x184] sm:$0xf]  ;;  %v1310_v23 = vor.u32 %v1557_v17, %v1309_v16  ;;  %v1575_v14 = vld [vmem:[#allocation6 + $0x18] sm:$0xff]  ;;  %v1594_v16 = vld [vmem:[#allocation6 + $0xb0] sm:$0xff] }
  0x43   :  { %702 = vmatpush.bf16.msra.mxu1 %v1350_v24  ;;  %v80_v24 = vperm.slane %v1748_v5, 0  ;;  %v1314_v29 = vor.u32 %v1556_v20, %v1311_v21  ;;  %v1576_v9 = vld [vmem:[#allocation6 + $0x20] sm:$0xff]  ;;  %v1574_v17 = vld [vmem:[#allocation6 + $0x10] sm:$0xff]  ;;  %v1603_v18 = vld [vmem:[#allocation6 + $0xf8] sm:$0xff] }
  0x44   :  { %716 = vmatpush.bf16.msra.mxu2 %v1290_v25  ;;  %v1583_v19 = vld [vmem:[#allocation6 + $0x58] sm:$0xff]  ;;  %v1593_v20 = vld [vmem:[#allocation6 + $0xa8] sm:$0xff] }
  0x45   :  { %730 = vmatpush.bf16.msra.mxu3 %v1354_v28  ;;  %v1573_v21 = vld [vmem:[#allocation6 + $0x8] sm:$0xff] }
  0x46   :  { %689 = vmatpush.bf16.msra.mxu0 %v1278_v32 }
  0x47   :  { %703 = vmatpush.bf16.msra.mxu1 %v1342_v36 }
  0x48   :  { %717 = vmatpush.bf16.msra.mxu2 %v1282_v37 }
  0x49   :  { %731 = vmatpush.bf16.msra.mxu3 %v1346_v40 }
  0x4a   :  { %690 = vmatpush.bf16.msra.mxu0 %v1270_v44  ;;  %v83_v44 = vperm.slane %v1748_v5, 3 }
  0x4b   :  { %704 = vmatpush.bf16.msra.mxu1 %v1334_v48 }
  0x4c   :  { %718 = vmatpush.bf16.msra.mxu2 %v1274_v49 }
  0x4d   :  { %732 = vmatpush.bf16.msra.mxu3 %v1338_v52 }
  0x4e   :  { %691 = vmatpush.bf16.msra.mxu0 %v1262_v56 }
  0x4f   :  { %705 = vmatpush.bf16.msra.mxu1 %v1326_v60 }
  0x50   :  { %719 = vmatpush.bf16.msra.mxu2 %v1266_v61 }
  0x51   :  { %733 = vmatpush.bf16.msra.mxu3 %v1330_v1  ;;  %v1586_v1 = vld [vmem:[#allocation6 + $0x70] sm:$0xff] }
  0x52   :  { %692 = vmatpush.bf16.msra.mxu0 %v1254_v6 }
  0x53   :  { %706 = vmatpush.bf16.msra.mxu1 %v1318_v7 }
  0x54   :  { %720 = vmatpush.bf16.msra.mxu2 %v1258_v11 }
  0x55   :  { %734 = vmatpush.bf16.msra.mxu3 %v1322_v15  ;;  %v1584_v15 = vld [vmem:[#allocation6 + $0x60] sm:$0xff] }
  0x56   :  { %693 = vmatpush.bf16.msra.mxu0 %v1246_v22  ;;  %v1602_v22 = vld [vmem:[#allocation6 + $0xf0] sm:$0xff] }
  0x57   :  { %707 = vmatpush.bf16.msra.mxu1 %v1310_v23  ;;  %v1582_v23 = vld [vmem:[#allocation6 + $0x50] sm:$0xff] }
  0x58   :  { %721 = vmatpush.bf16.msra.mxu2 %v1250_v27  ;;  %v1581_v27 = vld [vmem:[#allocation6 + $0x48] sm:$0xff] }
  0x59   :  { %735 = vmatpush.bf16.msra.mxu3 %v1314_v29  ;;  %v1600_v29 = vld [vmem:[#allocation6 + $0xe0] sm:$0xff] }
  0x96   :  { %v146_v25 = vpop.f32.mrf.mxu0 }
  0x97   :  { %v160_v28 = vpop.f32.mrf.mxu1  ;;  %v147_v30 = vadd.f32 %v146_v25, %v80_v24  ;;  %v1572_v25 = vld [vmem:[#allocation6] sm:$0xff] }
  0x98   :  { %v161_v31 = vadd.f32 %v160_v28, %v81_v26  ;;  %v1591_v28 = vld [vmem:[#allocation6 + $0x98] sm:$0xff] }
  0x99   :  { %v193_v33 = vmax.f32 %v147_v30, 0.0  ;;  %v1580_v30 = vld [vmem:[#allocation6 + $0x40] sm:$0xff] }
  0x9a   :  { %v194_v34 = vmax.f32 %v161_v31, 0.0  ;;  %v1590_v31 = vld [vmem:[#allocation6 + $0x90] sm:$0xff] }
  0x9c   :  { %v201_v41 = vpack.c.bf16 %v194_v34, %v193_v33  ;;  %v1589_v33 = vld [vmem:[#allocation6 + $0x88] sm:$0xff]  ;;  %v1598_v34 = vld [vmem:[#allocation6 + $0xd0] sm:$0xff] }
  0x9e   :  { %v174_v32 = vpop.f32.mrf.mxu2  ;;  %v148_v35 = vpop.f32.mrf.mxu0  ;;  %v246_v47 = vunpack.c.l.b16 %v201_v41  ;;  %v247_v48 = vunpack.c.h.b16 %v201_v41  ;;  %v1596_v41 = vld [vmem:[#allocation6 + $0xc0] sm:$0xff] }
  0x9f   :  { %v188_v36 = vpop.f32.mrf.mxu3  ;;  %v149_v37 = vadd.f32 %v148_v35, %v80_v24  ;;  %v162_v38 = vpop.f32.mrf.mxu1  ;;  %v175_v52 = vadd.f32 %v174_v32, %v82_v43  ;;  %v1592_v24 = vld [vmem:[#allocation6 + $0xa0] sm:$0xff]  ;;  %v1599_v32 = vld [vmem:[#allocation6 + $0xd8] sm:$0xff] }
  0xa0   :  { %v163_v39 = vadd.f32 %v162_v38, %v81_v26  ;;  %v189_v53 = vadd.f32 %v188_v36, %v83_v44  ;;  %v1601_v26 = vld [vmem:[#allocation6 + $0xe8] sm:$0xff]  ;;  %v1588_v35 = vld [vmem:[#allocation6 + $0x80] sm:$0xff] }
  0xa1   :  { %v197_v40 = vmax.f32 %v149_v37, 0.0  ;;  %v195_v60 = vmax.f32 %v175_v52, 0.0  ;;  %v1113_v36 = vld [vmem:[%s1773_s4 + $0x1] ss:$4 sm:$0x3]  ;;  %v1597_v37 = vld [vmem:[#allocation6 + $0xc8] sm:$0xff] }
  0xa2   :  { %v198_v42 = vmax.f32 %v163_v39, 0.0  ;;  %v196_v61 = vmax.f32 %v189_v53, 0.0 }
  0xa4   :  { %v203_v45 = vpack.c.bf16 %v198_v42, %v197_v40  ;;  %v202_v2 = vpack.c.bf16 %v196_v61, %v195_v60  ;;  %v240_v40 = vperm.slane %v1113_v36, 0 }
  0xa6   :  { %v176_v46 = vpop.f32.mrf.mxu2  ;;  %v248_v49 = vunpack.c.l.b16 %v203_v45  ;;  %v249_v50 = vunpack.c.h.b16 %v203_v45  ;;  %v518_v5 = vunpack.c.l.b16 %v202_v2  ;;  %v519_v6 = vunpack.c.h.b16 %v202_v2 }
  0xa7   :  { %v190_v51 = vpop.f32.mrf.mxu3  ;;  %v177_v54 = vadd.f32 %v176_v46, %v82_v43  ;;  %v241_v45 = vperm.slane %v1113_v36, 1 }
  0xa8   :  { %v191_v55 = vadd.f32 %v190_v51, %v83_v44  ;;  %v250_v56 = vpack.c.b16 %v248_v49, %v246_v47  ;;  %v251_v57 = vpack.c.b16 %v249_v50, %v247_v48 }
  0xa9   :  { %v199_v62 = vmax.f32 %v177_v54, 0.0  ;;  %v1242_v54 = vld [vmem:[%s1773_s4 + $0x9] ss:$4 sm:$0x3] }
  0xaa   :  { %422 = vmatmul.bf16.vlgmr.msrb.gmra.mxu0 %v250_v56  ;;  %436 = vmatmul.bf16.vlgmr.msrb.gmra.mxu1 %v251_v57  ;;  %v200_v63 = vmax.f32 %v191_v55, 0.0 }
  0xab   :  { %450 = vmatmul.bf16.vlgmr.msrb.gmra.mxu2 %v250_v56  ;;  %464 = vmatmul.bf16.vlgmr.msrb.gmra.mxu3 %v251_v57 }
  0xac   :  { %1033 = vmatpush.bf16.msrb.mxu2 %v1579_v58  ;;  %1047 = vmatpush.bf16.msrb.mxu3 %v1587_v59  ;;  %v204_v3 = vpack.c.bf16 %v200_v63, %v199_v62  ;;  %v512_v62 = vperm.slane %v1242_v54, 0 }
  0xad   :  { %909 = vmatpush.bf16.msrb.mxu0 %v1595_v13  ;;  %923 = vmatpush.bf16.msrb.mxu1 %v1603_v18 }
  0xae   :  { %v520_v7 = vunpack.c.l.b16 %v204_v3  ;;  %v521_v8 = vunpack.c.h.b16 %v204_v3 }
  0xb0   :  { %1034 = vmatpush.bf16.msrb.mxu2 %v1578_v0  ;;  %1048 = vmatpush.bf16.msrb.mxu3 %v1586_v1  ;;  %v522_v10 = vpack.c.b16 %v520_v7, %v518_v5  ;;  %v523_v11 = vpack.c.b16 %v521_v8, %v519_v6  ;;  %v513_v6 = vperm.slane %v1242_v54, 1 }
  0xb1   :  { %910 = vmatpush.bf16.msrb.mxu0 %v1594_v16  ;;  %924 = vmatpush.bf16.msrb.mxu1 %v1602_v22 }
  0xb4   :  { %1035 = vmatpush.bf16.msrb.mxu2 %v1577_v4  ;;  %1049 = vmatpush.bf16.msrb.mxu3 %v1585_v12 }
  0xb5   :  { %911 = vmatpush.bf16.msrb.mxu0 %v1593_v20  ;;  %925 = vmatpush.bf16.msrb.mxu1 %v1601_v26 }
  0xb8   :  { %1036 = vmatpush.bf16.msrb.mxu2 %v1576_v9  ;;  %1050 = vmatpush.bf16.msrb.mxu3 %v1584_v15 }
  0xb9   :  { %912 = vmatpush.bf16.msrb.mxu0 %v1592_v24  ;;  %926 = vmatpush.bf16.msrb.mxu1 %v1600_v29 }
  0xba   :  { %694 = vmatmul.bf16.vlgmr.msra.gmra.mxu0 %v522_v10  ;;  %708 = vmatmul.bf16.vlgmr.msra.gmra.mxu1 %v523_v11 }
  0xbb   :  { %722 = vmatmul.bf16.vlgmr.msra.gmra.mxu2 %v522_v10  ;;  %736 = vmatmul.bf16.vlgmr.msra.gmra.mxu3 %v523_v11 }
  0xbc   :  { %1037 = vmatpush.bf16.msrb.mxu2 %v1575_v14  ;;  %1051 = vmatpush.bf16.msrb.mxu3 %v1583_v19 }
  0xbd   :  { %913 = vmatpush.bf16.msrb.mxu0 %v1591_v28  ;;  %927 = vmatpush.bf16.msrb.mxu1 %v1599_v32 }
  0xc0   :  { %1038 = vmatpush.bf16.msrb.mxu2 %v1574_v17  ;;  %1052 = vmatpush.bf16.msrb.mxu3 %v1582_v23 }
  0xc1   :  { %914 = vmatpush.bf16.msrb.mxu0 %v1590_v31  ;;  %928 = vmatpush.bf16.msrb.mxu1 %v1598_v34 }
  0xc4   :  { %1039 = vmatpush.bf16.msrb.mxu2 %v1573_v21  ;;  %1053 = vmatpush.bf16.msrb.mxu3 %v1581_v27 }
  0xc5   :  { %915 = vmatpush.bf16.msrb.mxu0 %v1589_v33  ;;  %929 = vmatpush.bf16.msrb.mxu1 %v1597_v37 }
  0xc8   :  { %1040 = vmatpush.bf16.msrb.mxu2 %v1572_v25  ;;  %1054 = vmatpush.bf16.msrb.mxu3 %v1580_v30  ;;  %v1613_v30 = vld [vmem:[%s1773_s4 + $0x2] ss:$0 sm:$0xff] }
  0xc9   :  { %916 = vmatpush.bf16.msrb.mxu0 %v1588_v35  ;;  %930 = vmatpush.bf16.msrb.mxu1 %v1596_v41 }
 0x127   :  { %v423_v38 = vpop.f32.mrf.mxu0  ;;  %v437_v39 = vpop.f32.mrf.mxu1 }
 0x128   :  { %v424_v42 = vadd.f32 %v423_v38, %v240_v40 }
 0x12a   :  { %v438_v48 = vadd.f32 %v437_v39, %v424_v42 }
 0x12c   :  { %v470_v52 = vmax.f32 %v438_v48, 0.0 }
 0x12e   :  { %v451_v43 = vpop.f32.mrf.mxu2  ;;  %v465_v44 = vpop.f32.mrf.mxu3 }
 0x12f   :  { %v425_v46 = vpop.f32.mrf.mxu0  ;;  %v439_v47 = vpop.f32.mrf.mxu1  ;;  %v452_v51 = vadd.f32 %v451_v43, %v241_v45 }
 0x130   :  { %v426_v49 = vadd.f32 %v425_v46, %v240_v40 }
 0x131   :  { %v466_v58 = vadd.f32 %v465_v44, %v452_v51 }
 0x132   :  { %v440_v50 = vadd.f32 %v439_v47, %v426_v49 }
 0x133   :  { %v471_v0 = vmax.f32 %v466_v58, 0.0 }
 0x134   :  { %v472_v53 = vmax.f32 %v440_v50, 0.0 }
 0x136   :  { %v474_v55 = vpack.c.bf16 %v472_v53, %v470_v52  ;;  %v453_v56 = vpop.f32.mrf.mxu2  ;;  %v467_v57 = vpop.f32.mrf.mxu3 }
 0x137   :  { %v454_v59 = vadd.f32 %v453_v56, %v241_v45  ;;  %v695_v60 = vpop.f32.mrf.mxu0  ;;  %v709_v61 = vpop.f32.mrf.mxu1 }
 0x138   :  { %1041 = vmatmul.bf16.vlgmr.msrb.gmra.mxu2 %v474_v55  ;;  %v696_v2 = vadd.f32 %v695_v60, %v512_v62 }
 0x139   :  { %v468_v63 = vadd.f32 %v467_v57, %v454_v59 }
 0x13a   :  { %v710_v8 = vadd.f32 %v709_v61, %v696_v2 }
 0x13b   :  { %v473_v1 = vmax.f32 %v468_v63, 0.0 }
 0x13c   :  { %v742_v13 = vmax.f32 %v710_v8, 0.0 }
 0x13d   :  { %v475_v3 = vpack.c.bf16 %v473_v1, %v471_v0 }
 0x13e   :  { %v723_v4 = vpop.f32.mrf.mxu2  ;;  %v737_v5 = vpop.f32.mrf.mxu3 }
 0x13f   :  { %1055 = vmatmul.bf16.vlgmr.msrb.gmra.mxu3 %v475_v3  ;;  %v697_v7 = vpop.f32.mrf.mxu0  ;;  %v711_v10 = vpop.f32.mrf.mxu1  ;;  %v724_v12 = vadd.f32 %v723_v4, %v513_v6 }
 0x140   :  { %v698_v9 = vadd.f32 %v697_v7, %v512_v62 }
 0x141   :  { %v738_v17 = vadd.f32 %v737_v5, %v724_v12 }
 0x142   :  { %v712_v11 = vadd.f32 %v711_v10, %v698_v9 }
 0x143   :  { %v743_v21 = vmax.f32 %v738_v17, 0.0 }
 0x144   :  { %v744_v14 = vmax.f32 %v712_v11, 0.0 }
 0x146   :  { %v746_v15 = vpack.c.bf16 %v744_v14, %v742_v13  ;;  %v725_v16 = vpop.f32.mrf.mxu2  ;;  %v739_v19 = vpop.f32.mrf.mxu3 }
 0x147   :  { %v726_v18 = vadd.f32 %v725_v16, %v513_v6 }
 0x148   :  { %917 = vmatmul.bf16.vlgmr.msrb.gmra.mxu0 %v746_v15 }
 0x149   :  { %v740_v20 = vadd.f32 %v739_v19, %v726_v18 }
 0x14b   :  { %v745_v22 = vmax.f32 %v740_v20, 0.0 }
 0x14d   :  { %v747_v23 = vpack.c.bf16 %v745_v22, %v743_v21 }
 0x14f   :  { %931 = vmatmul.bf16.vlgmr.msrb.gmra.mxu1 %v747_v23 }
 0x1bb   :  { %v1042_v25 = vpop.f32.mrf.mxu2 }
 0x1c2   :  { %v1056_v28 = vpop.f32.mrf.mxu3 }
 0x1c3   :  { %v1044_v36 = vpop.f32.mrf.mxu2 }
 0x1c5   :  { %v918_v24 = vpop.f32.mrf.mxu0 }
 0x1ca   :  { %v1058_v38 = vpop.f32.mrf.mxu3 }
 0x1cc   :  { %v932_v26 = vpop.f32.mrf.mxu1 }
 0x1cd   :  { %v933_v27 = vadd.f32 %v932_v26, %v918_v24  ;;  %v920_v33 = vpop.f32.mrf.mxu0 }
 0x1cf   :  { %v1043_v29 = vadd.f32 %v1042_v25, %v933_v27 }
 0x1d1   :  { %v1057_v31 = vadd.f32 %v1056_v28, %v1043_v29 }
 0x1d3   :  { %v1063_v32 = vadd.f32 %v1613_v30, %v1057_v31 }
 0x1d4   :  { %v934_v34 = vpop.f32.mrf.mxu1 }
 0x1d5   :  { %1065 = vst [vmem:[%s1774_s5] sm:$0xff] %v1063_v32  ;;  %v935_v35 = vadd.f32 %v934_v34, %v920_v33 }
 0x1d7   :  { %v1045_v37 = vadd.f32 %v1044_v36, %v935_v35 }
 0x1d9   :  { %v1059_v39 = vadd.f32 %v1058_v38, %v1045_v37 }
 0x1db   :  { %v1064_v40 = vadd.f32 %v1613_v30, %v1059_v39 }
 0x1dd   :  { %1066 = vst [vmem:[%s1774_s5 + $0x8] sm:$0xff] %v1064_v40 }
 0x1de   :  { %1071 = vsyncpa [#allocation3], 1 }
 0x1df   :  { %1072 = vsyncpa [#allocation5], 1 }

</bundles_post_ra>
